<compile_context>
chip_gen: v5e
topology: v5e:2x2
jax: 0.10.0
libtpu: 0.0.40
codegen_flags: <defaults>
</compile_context>

<pallas_src>
import jax
import jax.numpy as jnp
from jax.experimental import pallas as pl
from jax.experimental.pallas import tpu as pltpu

# Small synthetic env dims (CartPole-like): 4 states, 2 actions.
NUM_STATES = 4
NUM_ACTIONS = 2
HIDDEN = 512
HEAD_PAD = 128   # fused (V | A) head zero-padded to a full 128-lane output


def dueling_kernel(x_ref, w1_ref, b1_ref, wh_ref, bh_ref, out_ref):
    x = x_ref[...]        # (B, NUM_STATES) f32
    w1 = w1_ref[...]      # (NUM_STATES, HIDDEN) f32

    # ---- Layer 1 on the VPU: K=4 broadcast FMAs; bias is the accumulator init.
    h = b1_ref[...] + x[:, 0:1] * w1[0:1, :]               # (B, HIDDEN)
    for k in range(1, NUM_STATES):                          # static unroll (K=4)
        h = h + x[:, k:k + 1] * w1[k:k + 1, :]
    h = jnp.maximum(h, 0.0)

    # ---- Fused V/A head: single lane-dense (B, 128) MXU pass, f32 accumulate.
    out_ref[...] = (
        jnp.dot(h, wh_ref[...], preferred_element_type=jnp.float32)
        + bh_ref[...]
    )


def fuse_head_params(wv, bv, wa, ba):
    """Pack V and A head params into one zero-padded, lane-dense weight/bias.

    Column 0 = V head, columns 1..NUM_ACTIONS = A head, remaining columns zero.
    Call once per parameter update (not per forward) to amortize the packing.
    """
    wh = jnp.zeros((HIDDEN, HEAD_PAD), jnp.float32)
    wh = wh.at[:, 0:1].set(wv).at[:, 1:1 + NUM_ACTIONS].set(wa)
    bh = jnp.zeros((1, HEAD_PAD), jnp.float32)
    bh = bh.at[:, 0:1].set(bv).at[:, 1:1 + NUM_ACTIONS].set(ba)
    return wh, bh


def dueling_forward(x, w1, b1, wh, bh):
    """Returns (V, A) exactly like DuelingModel.forward."""
    B = x.shape[0]
    vmem = pl.BlockSpec(memory_space=pltpu.MemorySpace.VMEM)
    out = pl.pallas_call(
        dueling_kernel,
        out_shape=jax.ShapeDtypeStruct((B, HEAD_PAD), jnp.float32),
        in_specs=[vmem, vmem, vmem, vmem, vmem],
        out_specs=vmem,
    )(x, w1, b1, wh, bh)
    V = out[:, 0:1]
    A = out[:, 1:1 + NUM_ACTIONS]
    # TODO(synk): for the full dueling combine, Q = V + A - mean(A) (and argmax)
    # could be fused into the kernel epilogue; omitted to keep module semantics.
    return V, A


def init_params(key):
    """Deterministic init mimicking nn.Linear's uniform(-1/sqrt(fan_in), +)."""
    k1, k2, k3, k4, k5, k6 = jax.random.split(key, 6)

    def lin(kw, kb, fan_in, fan_out):
        bound = 1.0 / jnp.sqrt(jnp.float32(fan_in))
        w = jax.random.uniform(kw, (fan_in, fan_out), jnp.float32,
                               minval=-bound, maxval=bound)
        b = jax.random.uniform(kb, (1, fan_out), jnp.float32,
                               minval=-bound, maxval=bound)
        return w, b

    w1, b1 = lin(k1, k2, NUM_STATES, HIDDEN)
    wv, bv = lin(k3, k4, HIDDEN, 1)
    wa, ba = lin(k5, k6, HIDDEN, NUM_ACTIONS)
    return w1, b1, wv, bv, wa, ba


if __name__ == "__main__":
    key = jax.random.PRNGKey(0)
    k_x, k_p = jax.random.split(key)

    B = 8
    x = jax.random.normal(k_x, (B, NUM_STATES), jnp.float32)
    w1, b1, wv, bv, wa, ba = init_params(k_p)
    wh, bh = fuse_head_params(wv, bv, wa, ba)       # one-time packing

    fwd = jax.jit(dueling_forward)
    V, A = fwd(x, w1, b1, wh, bh)
    V, A = jax.block_until_ready((V, A))

    # Pure-JAX reference (original unfused parameterization).
    h_ref = jnp.maximum(x @ w1 + b1, 0.0)
    V_ref = h_ref @ wv + bv
    A_ref = h_ref @ wa + ba
    assert V.shape == (B, 1) and A.shape == (B, NUM_ACTIONS)
    assert jnp.allclose(V, V_ref, atol=1e-4, rtol=1e-4)
    assert jnp.allclose(A, A_ref, atol=1e-4, rtol=1e-4)

    print("KERNEL_OK")
</pallas_src>

<mosaic_0001>
module attributes {stable_mosaic.version = 11 : i64} {
  func.func @dueling_kernel(%arg0: memref<8x4xf32, #tpu.memory_space<vmem>>, %arg1: memref<4x512xf32, #tpu.memory_space<vmem>>, %arg2: memref<1x512xf32, #tpu.memory_space<vmem>>, %arg3: memref<512x128xf32, #tpu.memory_space<vmem>>, %arg4: memref<1x128xf32, #tpu.memory_space<vmem>>, %arg5: memref<8x128xf32, #tpu.memory_space<vmem>>) attributes {dimension_semantics = [], scalar_prefetch = 0 : i64, scratch_operands = 0 : i64, tpu.core_type = #tpu.core_type<tc>} {
    %c0 = arith.constant 0 : index
    %c0_0 = arith.constant 0 : index
    %0 = vector.load %arg0[%c0, %c0_0] : memref<8x4xf32, #tpu.memory_space<vmem>>, vector<8x4xf32>
    %c0_1 = arith.constant 0 : index
    %c0_2 = arith.constant 0 : index
    %1 = vector.load %arg1[%c0_1, %c0_2] : memref<4x512xf32, #tpu.memory_space<vmem>>, vector<4x512xf32>
    %c0_3 = arith.constant 0 : index
    %c0_4 = arith.constant 0 : index
    %2 = vector.load %arg2[%c0_3, %c0_4] : memref<1x512xf32, #tpu.memory_space<vmem>>, vector<1x512xf32>
    %3 = vector.extract_strided_slice %0 {offsets = [0, 0], sizes = [8, 1], strides = [1, 1]} : vector<8x4xf32> to vector<8x1xf32>
    %4 = vector.extract_strided_slice %1 {offsets = [0, 0], sizes = [1, 512], strides = [1, 1]} : vector<4x512xf32> to vector<1x512xf32>
    %5 = vector.broadcast %3 : vector<8x1xf32> to vector<8x512xf32>
    %6 = vector.broadcast %4 : vector<1x512xf32> to vector<8x512xf32>
    %7 = arith.mulf %5, %6 : vector<8x512xf32>
    %8 = vector.broadcast %2 : vector<1x512xf32> to vector<8x512xf32>
    %9 = arith.addf %8, %7 : vector<8x512xf32>
    %10 = vector.extract_strided_slice %0 {offsets = [0, 1], sizes = [8, 1], strides = [1, 1]} : vector<8x4xf32> to vector<8x1xf32>
    %11 = vector.extract_strided_slice %1 {offsets = [1, 0], sizes = [1, 512], strides = [1, 1]} : vector<4x512xf32> to vector<1x512xf32>
    %12 = vector.broadcast %10 : vector<8x1xf32> to vector<8x512xf32>
    %13 = vector.broadcast %11 : vector<1x512xf32> to vector<8x512xf32>
    %14 = arith.mulf %12, %13 : vector<8x512xf32>
    %15 = arith.addf %9, %14 : vector<8x512xf32>
    %16 = vector.extract_strided_slice %0 {offsets = [0, 2], sizes = [8, 1], strides = [1, 1]} : vector<8x4xf32> to vector<8x1xf32>
    %17 = vector.extract_strided_slice %1 {offsets = [2, 0], sizes = [1, 512], strides = [1, 1]} : vector<4x512xf32> to vector<1x512xf32>
    %18 = vector.broadcast %16 : vector<8x1xf32> to vector<8x512xf32>
    %19 = vector.broadcast %17 : vector<1x512xf32> to vector<8x512xf32>
    %20 = arith.mulf %18, %19 : vector<8x512xf32>
    %21 = arith.addf %15, %20 : vector<8x512xf32>
    %22 = vector.extract_strided_slice %0 {offsets = [0, 3], sizes = [8, 1], strides = [1, 1]} : vector<8x4xf32> to vector<8x1xf32>
    %23 = vector.extract_strided_slice %1 {offsets = [3, 0], sizes = [1, 512], strides = [1, 1]} : vector<4x512xf32> to vector<1x512xf32>
    %24 = vector.broadcast %22 : vector<8x1xf32> to vector<8x512xf32>
    %25 = vector.broadcast %23 : vector<1x512xf32> to vector<8x512xf32>
    %26 = arith.mulf %24, %25 : vector<8x512xf32>
    %27 = arith.addf %21, %26 : vector<8x512xf32>
    %cst = arith.constant 0.000000e+00 : f32
    %28 = vector.broadcast %cst : f32 to vector<8x512xf32>
    %29 = arith.maximumf %27, %28 : vector<8x512xf32>
    %c0_5 = arith.constant 0 : index
    %c0_6 = arith.constant 0 : index
    %30 = vector.load %arg3[%c0_5, %c0_6] : memref<512x128xf32, #tpu.memory_space<vmem>>, vector<512x128xf32>
    %cst_7 = arith.constant dense<0.000000e+00> : vector<8x128xf32>
    %31 = tpu.matmul %29, %30, %cst_7 {dimension_numbers = #tpu.dot_dimension_numbers<[1], [0], [0], [1], [0, 0, 1, 1], [], []>} : vector<8x512xf32>, vector<512x128xf32>, vector<8x128xf32> -> vector<8x128xf32>
    %c0_8 = arith.constant 0 : index
    %c0_9 = arith.constant 0 : index
    %32 = vector.load %arg4[%c0_8, %c0_9] : memref<1x128xf32, #tpu.memory_space<vmem>>, vector<1x128xf32>
    %33 = vector.broadcast %32 : vector<1x128xf32> to vector<8x128xf32>
    %34 = arith.addf %31, %33 : vector<8x128xf32>
    %c0_10 = arith.constant 0 : index
    %c0_11 = arith.constant 0 : index
    %35 = vector.load %arg5[%c0_10, %c0_11] : memref<8x128xf32, #tpu.memory_space<vmem>>, vector<8x128xf32>
    tpu.vector_store %arg5[%c0_10, %c0_11], %34 {strides = array<i32>} : memref<8x128xf32, #tpu.memory_space<vmem>>, vector<8x128xf32>,
    return
  }
}

</mosaic_0001>

<bundles_post_ra>
// kernel: dueling_forward.1
= control target key start
LH: loop header
LB: loop body
LE: loop exit
PB: predicated region body
PF: predicated region fallthrough
CT: control target
= control target key end

     0   :  { %10 = vsyncpa [#allocation3], 0  ;;  %s443_s0 = inlined_call_operand.vmem [shape: f32[8,4], index: 0, kind: input, shape index: {}]   ;;  %s444_s1 = inlined_call_operand.hbm [shape: f32[4,512], index: 1, kind: input, shape index: {}]   ;;  %s445_s2 = inlined_call_operand.vmem [shape: f32[1,512], index: 2, kind: input, shape index: {}]   ;;  %s446_s3 = inlined_call_operand.hbm [shape: f32[512,128], index: 3, kind: input, shape index: {}]   ;;  %s447_s4 = inlined_call_operand.vmem [shape: f32[1,128], index: 4, kind: input, shape index: {}]   ;;  %s448_s5 = inlined_call_operand.vmem [shape: f32[8,128], index: 5, kind: output, shape index: {}]  }
   0x1   :  { %s19_s20 = sshll.u32 %s444_s1, 4  ;;  %s20_s20 = int_to_ptr.hbm [resolvable:$true] %s19_s20 }
   0x2   :  { %11 = vsyncpa [#allocation5], 0  ;;  %s387_s21 = smov [#allocation2]   ;;  %s31_s25 = sshll.u32 %s446_s3, 4  ;;  %s32_s25 = int_to_ptr.hbm [resolvable:$true] %s31_s25 }
   0x3   :  { %s21_s22 = sshll.u32 %s387_s21, 4  ;;  %s388_s26 = smov [#allocation4]   ;;  %s22_s22 = int_to_ptr.vmem [resolvable:$true] %s21_s22 }
   0x4   :  { %24 = dma.hbm_to_vmem [thread:$0]  %s20_s20, 256, %s22_s22, [#allocation3]  }
   0x5   :  { %s33_s27 = sshll.u32 %s388_s26, 4  ;;  %s389_s28 = smov 128   ;;  %s34_s27 = int_to_ptr.vmem [resolvable:$true] %s33_s27 }
   0x6   :  { %s390_s29 = smov 8  }
   0x7   :  { %39 = dma.hbm_to_vmem [thread:$0]  %s32_s25, 8192, %s34_s27, [#allocation5], %s389_s28, %s389_s28, %s390_s29  }
   0x8   :  { %383 = dma.done.wait [#allocation3], 256  }
   0x9   :  { %384 = vsyncadd [#allocation3], 4294967040 }
   0xa   :  { %385 = dma.done.wait [#allocation5], 8192  }
   0xb   :  { %386 = vsyncadd [#allocation5], 4294959104  ;;  %v391_v0 = vmov 0   ;;  %v392_v1 = vmov 2   ;;  %v50_v2 = vld [vmem:[%s443_s0] sm:$0xff]  ;;  %v181_v3 = vld [vmem:[#allocation4 + $0x78] sm:$0xff] }
   0xc   :  { %329 = vset.pattern.permute.xlu0 %v391_v0  ;;  %331 = vset.pattern.permute.xlu1 %v392_v1  ;;  %v197_v4 = vld [vmem:[#allocation4 + $0xf8] sm:$0xff]  ;;  %v180_v7 = vld [vmem:[#allocation4 + $0x70] sm:$0xff]  ;;  %v179_v11 = vld [vmem:[#allocation4 + $0x68] sm:$0xff]  ;;  %v393_v19 = vmov 1   ;;  %v394_v20 = vmov 3  }
   0xd   :  { %56 = vperm.xlu0 %329, %v50_v2   ;;  %115 = vperm.xlu1 %331, %v50_v2   ;;  %v213_v5 = vld [vmem:[#allocation4 + $0x178] sm:$0xff]  ;;  %v196_v8 = vld [vmem:[#allocation4 + $0xf0] sm:$0xff]  ;;  %v195_v12 = vld [vmem:[#allocation4 + $0xe8] sm:$0xff] }
   0xe   :  { %v229_v6 = vld [vmem:[#allocation4 + $0x1f8] sm:$0xff]  ;;  %234 = vmatpush.msra.mxu0 %v181_v3  ;;  %254 = vmatpush.msra.mxu1 %v197_v4  ;;  %v212_v9 = vld [vmem:[#allocation4 + $0x170] sm:$0xff]  ;;  %v211_v13 = vld [vmem:[#allocation4 + $0x168] sm:$0xff] }
   0xf   :  { %v228_v10 = vld [vmem:[#allocation4 + $0x1f0] sm:$0xff]  ;;  %274 = vmatpush.msra.mxu2 %v213_v5  ;;  %294 = vmatpush.msra.mxu3 %v229_v6  ;;  %v227_v14 = vld [vmem:[#allocation4 + $0x1e8] sm:$0xff]  ;;  %v178_v15 = vld [vmem:[#allocation4 + $0x60] sm:$0xff] }
  0x10   :  { %235 = vmatpush.msra.mxu0 %v180_v7  ;;  %255 = vmatpush.msra.mxu1 %v196_v8  ;;  %v194_v16 = vld [vmem:[#allocation4 + $0xe0] sm:$0xff]  ;;  %v177_v21 = vld [vmem:[#allocation4 + $0x58] sm:$0xff]  ;;  %v176_v25 = vld [vmem:[#allocation4 + $0x50] sm:$0xff] }
  0x11   :  { %275 = vmatpush.msra.mxu2 %v212_v9  ;;  %295 = vmatpush.msra.mxu3 %v228_v10  ;;  %v210_v17 = vld [vmem:[#allocation4 + $0x160] sm:$0xff]  ;;  %v193_v22 = vld [vmem:[#allocation4 + $0xd8] sm:$0xff]  ;;  %v192_v26 = vld [vmem:[#allocation4 + $0xd0] sm:$0xff] }
  0x12   :  { %236 = vmatpush.msra.mxu0 %v179_v11  ;;  %256 = vmatpush.msra.mxu1 %v195_v12  ;;  %v226_v18 = vld [vmem:[#allocation4 + $0x1e0] sm:$0xff]  ;;  %v209_v23 = vld [vmem:[#allocation4 + $0x158] sm:$0xff]  ;;  %v208_v27 = vld [vmem:[#allocation4 + $0x150] sm:$0xff] }
  0x13   :  { %276 = vmatpush.msra.mxu2 %v211_v13  ;;  %296 = vmatpush.msra.mxu3 %v227_v14  ;;  %v225_v24 = vld [vmem:[#allocation4 + $0x1d8] sm:$0xff]  ;;  %v224_v28 = vld [vmem:[#allocation4 + $0x1d0] sm:$0xff]  ;;  %v175_v29 = vld [vmem:[#allocation4 + $0x48] sm:$0xff] }
  0x14   :  { %237 = vmatpush.msra.mxu0 %v178_v15  ;;  %257 = vmatpush.msra.mxu1 %v194_v16  ;;  %v191_v30 = vld [vmem:[#allocation4 + $0xc8] sm:$0xff]  ;;  %v174_v33 = vld [vmem:[#allocation4 + $0x40] sm:$0xff]  ;;  %v173_v37 = vld [vmem:[#allocation4 + $0x38] sm:$0xff] }
  0x15   :  { %330 = vset.pattern.permute.xlu0 %v393_v19  ;;  %332 = vset.pattern.permute.xlu1 %v394_v20  ;;  %v207_v31 = vld [vmem:[#allocation4 + $0x148] sm:$0xff]  ;;  %v190_v34 = vld [vmem:[#allocation4 + $0xc0] sm:$0xff]  ;;  %v189_v38 = vld [vmem:[#allocation4 + $0xb8] sm:$0xff] }
  0x16   :  { %91 = vperm.xlu0 %330, %v50_v2   ;;  %139 = vperm.xlu1 %332, %v50_v2   ;;  %v223_v32 = vld [vmem:[#allocation4 + $0x1c8] sm:$0xff]  ;;  %v206_v35 = vld [vmem:[#allocation4 + $0x140] sm:$0xff]  ;;  %v205_v39 = vld [vmem:[#allocation4 + $0x138] sm:$0xff] }
  0x17   :  { %277 = vmatpush.msra.mxu2 %v210_v17  ;;  %297 = vmatpush.msra.mxu3 %v226_v18  ;;  %v222_v36 = vld [vmem:[#allocation4 + $0x1c0] sm:$0xff]  ;;  %v221_v40 = vld [vmem:[#allocation4 + $0x1b8] sm:$0xff]  ;;  %v172_v41 = vld [vmem:[#allocation4 + $0x30] sm:$0xff] }
  0x18   :  { %238 = vmatpush.msra.mxu0 %v177_v21  ;;  %258 = vmatpush.msra.mxu1 %v193_v22  ;;  %v188_v42 = vld [vmem:[#allocation4 + $0xb0] sm:$0xff]  ;;  %v171_v45 = vld [vmem:[#allocation4 + $0x28] sm:$0xff]  ;;  %v170_v49 = vld [vmem:[#allocation4 + $0x20] sm:$0xff] }
  0x19   :  { %278 = vmatpush.msra.mxu2 %v209_v23  ;;  %298 = vmatpush.msra.mxu3 %v225_v24  ;;  %v204_v43 = vld [vmem:[#allocation4 + $0x130] sm:$0xff]  ;;  %v187_v46 = vld [vmem:[#allocation4 + $0xa8] sm:$0xff]  ;;  %v186_v50 = vld [vmem:[#allocation4 + $0xa0] sm:$0xff] }
  0x1a   :  { %239 = vmatpush.msra.mxu0 %v176_v25  ;;  %259 = vmatpush.msra.mxu1 %v192_v26  ;;  %v220_v44 = vld [vmem:[#allocation4 + $0x1b0] sm:$0xff]  ;;  %v203_v47 = vld [vmem:[#allocation4 + $0x128] sm:$0xff]  ;;  %v202_v51 = vld [vmem:[#allocation4 + $0x120] sm:$0xff] }
  0x1b   :  { %279 = vmatpush.msra.mxu2 %v208_v27  ;;  %299 = vmatpush.msra.mxu3 %v224_v28  ;;  %v219_v48 = vld [vmem:[#allocation4 + $0x1a8] sm:$0xff]  ;;  %v218_v52 = vld [vmem:[#allocation4 + $0x1a0] sm:$0xff]  ;;  %v169_v53 = vld [vmem:[#allocation4 + $0x18] sm:$0xff] }
  0x1c   :  { %240 = vmatpush.msra.mxu0 %v175_v29  ;;  %260 = vmatpush.msra.mxu1 %v191_v30  ;;  %v185_v54 = vld [vmem:[#allocation4 + $0x98] sm:$0xff]  ;;  %v168_v57 = vld [vmem:[#allocation4 + $0x10] sm:$0xff]  ;;  %v167_v61 = vld [vmem:[#allocation4 + $0x8] sm:$0xff] }
  0x1d   :  { %280 = vmatpush.msra.mxu2 %v207_v31  ;;  %300 = vmatpush.msra.mxu3 %v223_v32  ;;  %v201_v55 = vld [vmem:[#allocation4 + $0x118] sm:$0xff]  ;;  %v184_v58 = vld [vmem:[#allocation4 + $0x90] sm:$0xff]  ;;  %v183_v62 = vld [vmem:[#allocation4 + $0x88] sm:$0xff] }
  0x1e   :  { %333 = vset.pattern.permute.xlu0 %v394_v20  ;;  %241 = vmatpush.msra.mxu0 %v174_v33  ;;  %v217_v56 = vld [vmem:[#allocation4 + $0x198] sm:$0xff]  ;;  %v200_v59 = vld [vmem:[#allocation4 + $0x110] sm:$0xff]  ;;  %v199_v63 = vld [vmem:[#allocation4 + $0x108] sm:$0xff] }
  0x1f   :  { %261 = vmatpush.msra.mxu1 %v190_v34  ;;  %281 = vmatpush.msra.mxu2 %v206_v35  ;;  %v216_v60 = vld [vmem:[#allocation4 + $0x190] sm:$0xff]  ;;  %v215_v0 = vld [vmem:[#allocation4 + $0x188] sm:$0xff]  ;;  %v166_v1 = vld [vmem:[#allocation4] sm:$0xff] }
  0x20   :  { %301 = vmatpush.msra.mxu3 %v222_v36  ;;  %242 = vmatpush.msra.mxu0 %v173_v37  ;;  %v182_v2 = vld [vmem:[#allocation4 + $0x80] sm:$0xff]  ;;  %v51_v5 = vld [vmem:[#allocation2] sm:$0xff]  ;;  %v52_v6 = vld [vmem:[#allocation2 + $0x8] sm:$0xff] }
  0x21   :  { %262 = vmatpush.msra.mxu1 %v189_v38  ;;  %282 = vmatpush.msra.mxu2 %v205_v39  ;;  %v198_v3 = vld [vmem:[#allocation4 + $0x100] sm:$0xff]  ;;  %v61_v7 = vperm.slane %v51_v5, 0  ;;  %v62_v8 = vperm.slane %v51_v5, 4  ;;  %v63_v9 = vperm.slane %v52_v6, 0  ;;  %v64_v10 = vperm.slane %v52_v6, 4 }
  0x22   :  { %302 = vmatpush.msra.mxu3 %v221_v40  ;;  %243 = vmatpush.msra.mxu0 %v172_v41  ;;  %v214_v4 = vld [vmem:[#allocation4 + $0x180] sm:$0xff]  ;;  %v118_v11 = vperm.slane %v51_v5, 2  ;;  %v119_v12 = vperm.slane %v51_v5, 6  ;;  %v120_v13 = vperm.slane %v52_v6, 2  ;;  %v121_v14 = vperm.slane %v52_v6, 6 }
  0x23   :  { %263 = vmatpush.msra.mxu1 %v188_v42  ;;  %283 = vmatpush.msra.mxu2 %v204_v43  ;;  %v69_v15 = vperm.slane %v61_v7, 0  ;;  %v70_v16 = vperm.slane %v62_v8, 0  ;;  %v71_v17 = vperm.slane %v63_v9, 0  ;;  %v72_v18 = vperm.slane %v64_v10, 0  ;;  %v53_v25 = vld [vmem:[%s445_s2] sm:$0xf] }
  0x24   :  { %303 = vmatpush.msra.mxu3 %v220_v44  ;;  %244 = vmatpush.msra.mxu0 %v171_v45  ;;  %v126_v21 = vperm.slane %v118_v11, 2  ;;  %v127_v22 = vperm.slane %v119_v12, 2  ;;  %v128_v23 = vperm.slane %v120_v13, 2  ;;  %v129_v24 = vperm.slane %v121_v14, 2 }
  0x25   :  { %264 = vmatpush.msra.mxu1 %v187_v46  ;;  %284 = vmatpush.msra.mxu2 %v203_v47  ;;  %v94_v26 = vperm.slane %v51_v5, 1  ;;  %v95_v27 = vperm.slane %v51_v5, 5  ;;  %v96_v28 = vperm.slane %v52_v6, 1  ;;  %v97_v29 = vperm.slane %v52_v6, 5 }
  0x26   :  { %304 = vmatpush.msra.mxu3 %v219_v48  ;;  %245 = vmatpush.msra.mxu0 %v170_v49  ;;  %v142_v30 = vperm.slane %v51_v5, 3  ;;  %v143_v31 = vperm.slane %v51_v5, 7  ;;  %v144_v32 = vperm.slane %v52_v6, 3  ;;  %v145_v33 = vperm.slane %v52_v6, 7 }
  0x27   :  { %265 = vmatpush.msra.mxu1 %v186_v50  ;;  %285 = vmatpush.msra.mxu2 %v202_v51  ;;  %v78_v34 = vperm.slane %v53_v25, 0  ;;  %v79_v35 = vperm.slane %v53_v25, 1  ;;  %v80_v36 = vperm.slane %v53_v25, 2  ;;  %v81_v37 = vperm.slane %v53_v25, 3 }
  0x28   :  { %305 = vmatpush.msra.mxu3 %v218_v52  ;;  %246 = vmatpush.msra.mxu0 %v169_v53  ;;  %v102_v42 = vperm.slane %v94_v26, 1  ;;  %v103_v43 = vperm.slane %v95_v27, 1  ;;  %v104_v44 = vperm.slane %v96_v28, 1  ;;  %v105_v45 = vperm.slane %v97_v29, 1 }
  0x29   :  { %266 = vmatpush.msra.mxu1 %v185_v54  ;;  %286 = vmatpush.msra.mxu2 %v201_v55  ;;  %v150_v46 = vperm.slane %v142_v30, 3  ;;  %v151_v47 = vperm.slane %v143_v31, 3  ;;  %v152_v48 = vperm.slane %v144_v32, 3  ;;  %v153_v49 = vperm.slane %v145_v33, 3 }
  0x2a   :  { %306 = vmatpush.msra.mxu3 %v217_v56  ;;  %247 = vmatpush.msra.mxu0 %v168_v57 }
  0x2b   :  { %267 = vmatpush.msra.mxu1 %v184_v58  ;;  %287 = vmatpush.msra.mxu2 %v200_v59 }
  0x2c   :  { %307 = vmatpush.msra.mxu3 %v216_v60  ;;  %248 = vmatpush.msra.mxu0 %v167_v61 }
  0x2d   :  { %268 = vmatpush.msra.mxu1 %v183_v62  ;;  %288 = vmatpush.msra.mxu2 %v199_v63 }
  0x2e   :  { %308 = vmatpush.msra.mxu3 %v215_v0  ;;  %249 = vmatpush.msra.mxu0 %v166_v1 }
  0x2f   :  { %269 = vmatpush.msra.mxu1 %v182_v2  ;;  %289 = vmatpush.msra.mxu2 %v198_v3 }
  0x30   :  { %309 = vmatpush.msra.mxu3 %v214_v4 }
  0x7f   :  { %v57_v19 = vpop.permute.xlu0 %56  ;;  %v116_v20 = vpop.permute.xlu1 %115 }
  0x80   :  { %v73_v38 = vmul.f32 %v69_v15, %v57_v19  ;;  %v74_v39 = vmul.f32 %v70_v16, %v57_v19  ;;  %v75_v40 = vmul.f32 %v71_v17, %v57_v19  ;;  %v76_v41 = vmul.f32 %v72_v18, %v57_v19 }
  0x81   :  { %v130_v50 = vmul.f32 %v126_v21, %v116_v20  ;;  %v131_v51 = vmul.f32 %v127_v22, %v116_v20  ;;  %v132_v52 = vmul.f32 %v128_v23, %v116_v20  ;;  %v133_v53 = vmul.f32 %v129_v24, %v116_v20  ;;  %v334_v20 = vld [vmem:[%s447_s4] ss:$0 sm:$0xff] }
  0x82   :  { %v86_v54 = vadd.f32 %v78_v34, %v73_v38  ;;  %v87_v55 = vadd.f32 %v79_v35, %v74_v39  ;;  %v88_v56 = vadd.f32 %v80_v36, %v75_v40  ;;  %v89_v57 = vadd.f32 %v81_v37, %v76_v41 }
  0x88   :  { %v92_v58 = vpop.permute.xlu0 %91  ;;  %v140_v59 = vpop.permute.xlu1 %139 }
  0x89   :  { %v106_v60 = vmul.f32 %v102_v42, %v92_v58  ;;  %v107_v61 = vmul.f32 %v103_v43, %v92_v58  ;;  %v108_v62 = vmul.f32 %v104_v44, %v92_v58  ;;  %v109_v63 = vmul.f32 %v105_v45, %v92_v58 }
  0x8a   :  { %v154_v0 = vmul.f32 %v150_v46, %v140_v59  ;;  %v155_v1 = vmul.f32 %v151_v47, %v140_v59  ;;  %v156_v2 = vmul.f32 %v152_v48, %v140_v59  ;;  %v157_v3 = vmul.f32 %v153_v49, %v140_v59 }
  0x8b   :  { %v110_v4 = vadd.f32 %v106_v60, %v86_v54  ;;  %v111_v5 = vadd.f32 %v107_v61, %v87_v55  ;;  %v112_v6 = vadd.f32 %v108_v62, %v88_v56  ;;  %v113_v7 = vadd.f32 %v109_v63, %v89_v57 }
  0x8d   :  { %v134_v8 = vadd.f32 %v130_v50, %v110_v4  ;;  %v135_v9 = vadd.f32 %v131_v51, %v111_v5  ;;  %v136_v10 = vadd.f32 %v132_v52, %v112_v6  ;;  %v137_v11 = vadd.f32 %v133_v53, %v113_v7 }
  0x8f   :  { %v158_v12 = vadd.f32 %v154_v0, %v134_v8  ;;  %v159_v13 = vadd.f32 %v155_v1, %v135_v9  ;;  %v160_v14 = vadd.f32 %v156_v2, %v136_v10  ;;  %v161_v15 = vadd.f32 %v157_v3, %v137_v11 }
  0x91   :  { %v162_v16 = vmax.f32 %v158_v12, 0.0  ;;  %v163_v17 = vmax.f32 %v159_v13, 0.0  ;;  %v164_v18 = vmax.f32 %v160_v14, 0.0  ;;  %v165_v19 = vmax.f32 %v161_v15, 0.0 }
  0x93   :  { %250 = vmatmul.f32.vlgmr.msra.gmra.mxu0 %v162_v16  ;;  %270 = vmatmul.f32.vlgmr.msra.gmra.mxu1 %v163_v17 }
  0x94   :  { %290 = vmatmul.f32.vlgmr.msra.gmra.mxu2 %v164_v18  ;;  %310 = vmatmul.f32.vlgmr.msra.gmra.mxu3 %v165_v19 }
 0x110   :  { %v251_v21 = vpop.f32.mrf.mxu0  ;;  %v271_v23 = vpop.f32.mrf.mxu1 }
 0x111   :  { %v252_v22 = vadd.f32 %v334_v20, %v251_v21 }
 0x113   :  { %v272_v24 = vadd.f32 %v271_v23, %v252_v22 }
 0x117   :  { %v291_v25 = vpop.f32.mrf.mxu2  ;;  %v311_v27 = vpop.f32.mrf.mxu3 }
 0x118   :  { %v292_v26 = vadd.f32 %v291_v25, %v272_v24 }
 0x11a   :  { %v312_v28 = vadd.f32 %v311_v27, %v292_v26 }
 0x11c   :  { %314 = vst [vmem:[%s448_s5] sm:$0xff] %v312_v28 }
 0x11d   :  { %319 = vsyncpa [#allocation3], 1 }
 0x11e   :  { %320 = vsyncpa [#allocation5], 1 }

</bundles_post_ra>
